<compile_context>
chip_gen: v7x
topology: tpu7x:2x2x1
jax: 0.10.0
libtpu: 0.0.40
codegen_flags: <defaults>
</compile_context>

<pallas_src>
import jax
import jax.numpy as jnp
from jax.experimental import pallas as pl
from jax.experimental.pallas import tpu as pltpu

INPUT_SIZE = 784
HIDDEN_SIZE = 128
NUM_CLASSES = 10
N_PAD = 128  # w2 padded to full lane width for one clean MXU pass


def _round_up(x, m):
    return (x + m - 1) // m * m


# --------------------------------------------------------------------------- #
# Kernel
# --------------------------------------------------------------------------- #
def mlp_kernel(x_ref, w1_ref, b1_ref, w2_ref, b2_ref, o_ref):
    # x:  (TB, 784) f32    w1: (784, 128) bf16   b1: (1, 128) f32
    # w2: (128, 128) bf16  b2: (1, 10)   f32     o:  (TB, 10) f32
    x_bf = x_ref[...].astype(jnp.bfloat16)            # in-kernel cast (hidden under DMA)
    h = jnp.dot(x_bf, w1_ref[...], preferred_element_type=jnp.float32)
    h = jnp.maximum(h + b1_ref[...], 0.0)             # bias + ReLU in f32
    out = jnp.dot(h.astype(jnp.bfloat16), w2_ref[...],
                  preferred_element_type=jnp.float32)  # (TB, 128)
    o_ref[...] = (out[:, :NUM_CLASSES] + b2_ref[...]).astype(o_ref.dtype)


# --------------------------------------------------------------------------- #
# Wrapper
# --------------------------------------------------------------------------- #
def prepare_params(w1, b1, w2, b2):
    """One-time weight pad/cast, hoisted out of the per-call path."""
    w1_bf = w1.astype(jnp.bfloat16)                                             # (784, 128)
    w2_bf = jnp.pad(w2, ((0, 0), (0, N_PAD - NUM_CLASSES))).astype(jnp.bfloat16)  # (128, 128)
    b1_f = b1.astype(jnp.float32).reshape(1, HIDDEN_SIZE)
    b2_f = b2.astype(jnp.float32).reshape(1, NUM_CLASSES)
    return w1_bf, b1_f, w2_bf, b2_f


def _choose_tile_b(B, max_tile):
    """Pick a batch tile: minimize padding waste, keep >=2 grid steps when possible."""
    B16 = _round_up(max(B, 1), 16)
    if B16 <= 16:
        return 16
    cap = min(max_tile, max(16, B16 // 2))   # >=2 grid steps -> both v7x TCs get work
    cands = [t for t in (2048, 1024, 512, 256, 128, 64, 32, 16) if t <= cap]
    # Minimize wasted padded rows; tie-break toward the larger tile (fewer steps).
    return min(cands, key=lambda t: (_round_up(B, t) - B, -t))


def _weight_spec(shape, buffered):
    idx = lambda i: (0,) * len(shape)
    if buffered:
        return pl.BlockSpec(shape, idx, pipeline_mode=pl.Buffered(1))
    return pl.BlockSpec(shape, idx)


def _mlp_call(x_p, w1_bf, b1_f, w2_bf, b2_f, *, tile_b, buffered):
    B_pad = x_p.shape[0]
    grid = (B_pad // tile_b,)

    flops = 2 * B_pad * INPUT_SIZE * HIDDEN_SIZE + 2 * B_pad * HIDDEN_SIZE * N_PAD
    bytes_accessed = (x_p.size * 4 + w1_bf.size * 2 + w2_bf.size * 2
                      + b1_f.size * 4 + b2_f.size * 4 + B_pad * NUM_CLASSES * 4)

    return pl.pallas_call(
        mlp_kernel,
        out_shape=jax.ShapeDtypeStruct((B_pad, NUM_CLASSES), jnp.float32),
        grid_spec=pl.GridSpec(
            grid=grid,
            in_specs=[
                pl.BlockSpec((tile_b, INPUT_SIZE), lambda i: (i, 0)),   # x tile (f32, unpadded K)
                _weight_spec((INPUT_SIZE, HIDDEN_SIZE), buffered),      # w1 (resident)
                _weight_spec((1, HIDDEN_SIZE), buffered),               # b1 (resident)
                _weight_spec((HIDDEN_SIZE, N_PAD), buffered),           # w2 (resident, lane-padded)
                _weight_spec((1, NUM_CLASSES), buffered),               # b2 (resident, unpadded)
            ],
            out_specs=pl.BlockSpec((tile_b, NUM_CLASSES), lambda i: (i, 0)),
        ),
        compiler_params=pltpu.CompilerParams(
            dimension_semantics=("parallel",),        # batch tiles independent -> megacore
            vmem_limit_bytes=32 * 1024 * 1024,
        ),
        cost_estimate=pl.CostEstimate(
            flops=flops, transcendentals=0, bytes_accessed=bytes_accessed),
    )(x_p, w1_bf, b1_f, w2_bf, b2_f)


def neural_net_forward(x, params, *, max_tile_b=1024):
    """x: (B, 784) f32, params from prepare_params -> (B, 10) f32 logits."""
    w1_bf, b1_f, w2_bf, b2_f = params
    B = x.shape[0]
    tile_b = _choose_tile_b(B, max_tile_b)
    B_pad = _round_up(B, tile_b)
    x_p = x if B_pad == B else jnp.pad(x, ((0, B_pad - B), (0, 0)))

    try:
        out = _mlp_call(x_p, w1_bf, b1_f, w2_bf, b2_f, tile_b=tile_b, buffered=True)
    except Exception:
        # pipeline_mode=pl.Buffered(1) unsupported by this build; plain specs.
        out = _mlp_call(x_p, w1_bf, b1_f, w2_bf, b2_f, tile_b=tile_b, buffered=False)

    return out if B_pad == B else out[:B]


# --------------------------------------------------------------------------- #
# Demo / self-check
# --------------------------------------------------------------------------- #
def init_params(key):
    """PyTorch nn.Linear-style init (U[-1/sqrt(fan_in), 1/sqrt(fan_in)]), weights (in, out)."""
    k1, k2, k3, k4 = jax.random.split(key, 4)
    bound1 = 1.0 / jnp.sqrt(jnp.float32(INPUT_SIZE))
    bound2 = 1.0 / jnp.sqrt(jnp.float32(HIDDEN_SIZE))
    w1 = jax.random.uniform(k1, (INPUT_SIZE, HIDDEN_SIZE), jnp.float32, -bound1, bound1)
    b1 = jax.random.uniform(k2, (HIDDEN_SIZE,), jnp.float32, -bound1, bound1)
    w2 = jax.random.uniform(k3, (HIDDEN_SIZE, NUM_CLASSES), jnp.float32, -bound2, bound2)
    b2 = jax.random.uniform(k4, (NUM_CLASSES,), jnp.float32, -bound2, bound2)
    return w1, b1, w2, b2


if __name__ == "__main__":
    key = jax.random.PRNGKey(0)
    k_params, k_x = jax.random.split(key)
    w1, b1, w2, b2 = init_params(k_params)
    params = prepare_params(w1, b1, w2, b2)

    B = 8  # small batch, input shape (B, 784) as implied by the module
    x = jax.random.normal(k_x, (B, INPUT_SIZE), jnp.float32)

    out = neural_net_forward(x, params)
    out = jax.block_until_ready(out)
    assert out.shape == (B, NUM_CLASSES)

    # Reference 1: pure-JAX forward with the same bf16 quantization (tight check).
    h_ref = jnp.maximum(
        jnp.dot(x.astype(jnp.bfloat16), w1.astype(jnp.bfloat16),
                preferred_element_type=jnp.float32) + b1, 0.0)
    ref_bf16 = jnp.dot(h_ref.astype(jnp.bfloat16), w2.astype(jnp.bfloat16),
                       preferred_element_type=jnp.float32) + b2
    assert jnp.allclose(out, ref_bf16, atol=2e-2, rtol=2e-2)

    # Reference 2: full-f32 PyTorch-equivalent forward (looser sanity check).
    ref_f32 = jnp.maximum(x @ w1 + b1, 0.0) @ w2 + b2
    assert jnp.allclose(out, ref_f32, atol=5e-2, rtol=5e-2)

    print("KERNEL_OK")
</pallas_src>

<mosaic_0001>
module attributes {stable_mosaic.version = 11 : i64} {
  func.func @mlp_kernel(%arg0: i32, %arg1: memref<16x784xf32, #tpu.memory_space<vmem>>, %arg2: memref<784x128xbf16, #tpu.memory_space<vmem>>, %arg3: memref<1x128xf32, #tpu.memory_space<vmem>>, %arg4: memref<128x128xbf16, #tpu.memory_space<vmem>>, %arg5: memref<1x10xf32, #tpu.memory_space<vmem>>, %arg6: memref<16x10xf32, #tpu.memory_space<vmem>>) attributes {dimension_semantics = [#tpu.dimension_semantics<parallel>], iteration_bounds = array<i64: 1>, scalar_prefetch = 0 : i64, scratch_operands = 0 : i64, tpu.core_type = #tpu.core_type<tc>, window_params = [{transform_indices = @transform_0, window_bounds = array<i64: 16, 784>}, {pipeline_mode = #tpu.pipeline_mode<synchronous>, transform_indices = @transform_1, window_bounds = array<i64: 784, 128>}, {pipeline_mode = #tpu.pipeline_mode<synchronous>, transform_indices = @transform_2, window_bounds = array<i64: 1, 128>}, {pipeline_mode = #tpu.pipeline_mode<synchronous>, transform_indices = @transform_3, window_bounds = array<i64: 128, 128>}, {pipeline_mode = #tpu.pipeline_mode<synchronous>, transform_indices = @transform_4, window_bounds = array<i64: 1, 10>}, {transform_indices = @transform_5, window_bounds = array<i64: 16, 10>}]} {
    %c0 = arith.constant 0 : index
    %c0_0 = arith.constant 0 : index
    %0 = vector.load %arg1[%c0, %c0_0] : memref<16x784xf32, #tpu.memory_space<vmem>>, vector<16x784xf32>
    %1 = arith.truncf %0 : vector<16x784xf32> to vector<16x784xbf16>
    %c0_1 = arith.constant 0 : index
    %c0_2 = arith.constant 0 : index
    %2 = vector.load %arg2[%c0_1, %c0_2] : memref<784x128xbf16, #tpu.memory_space<vmem>>, vector<784x128xbf16>
    %cst = arith.constant dense<0.000000e+00> : vector<16x128xf32>
    %3 = tpu.matmul %1, %2, %cst {dimension_numbers = #tpu.dot_dimension_numbers<[1], [0], [0], [1], [0, 0, 1, 1], [], []>} : vector<16x784xbf16>, vector<784x128xbf16>, vector<16x128xf32> -> vector<16x128xf32>
    %c0_3 = arith.constant 0 : index
    %c0_4 = arith.constant 0 : index
    %4 = vector.load %arg3[%c0_3, %c0_4] : memref<1x128xf32, #tpu.memory_space<vmem>>, vector<1x128xf32>
    %5 = vector.broadcast %4 : vector<1x128xf32> to vector<16x128xf32>
    %6 = arith.addf %3, %5 : vector<16x128xf32>
    %cst_5 = arith.constant 0.000000e+00 : f32
    %7 = vector.broadcast %cst_5 : f32 to vector<16x128xf32>
    %8 = arith.maximumf %6, %7 : vector<16x128xf32>
    %9 = arith.truncf %8 : vector<16x128xf32> to vector<16x128xbf16>
    %c0_6 = arith.constant 0 : index
    %c0_7 = arith.constant 0 : index
    %10 = vector.load %arg4[%c0_6, %c0_7] : memref<128x128xbf16, #tpu.memory_space<vmem>>, vector<128x128xbf16>
    %cst_8 = arith.constant dense<0.000000e+00> : vector<16x128xf32>
    %11 = tpu.matmul %9, %10, %cst_8 {dimension_numbers = #tpu.dot_dimension_numbers<[1], [0], [0], [1], [0, 0, 1, 1], [], []>} : vector<16x128xbf16>, vector<128x128xbf16>, vector<16x128xf32> -> vector<16x128xf32>
    %12 = vector.extract_strided_slice %11 {offsets = [0, 0], sizes = [16, 10], strides = [1, 1]} : vector<16x128xf32> to vector<16x10xf32>
    %c0_9 = arith.constant 0 : index
    %c0_10 = arith.constant 0 : index
    %13 = vector.load %arg5[%c0_9, %c0_10] : memref<1x10xf32, #tpu.memory_space<vmem>>, vector<1x10xf32>
    %14 = vector.broadcast %13 : vector<1x10xf32> to vector<16x10xf32>
    %15 = arith.addf %12, %14 : vector<16x10xf32>
    %c0_11 = arith.constant 0 : index
    %c0_12 = arith.constant 0 : index
    %16 = vector.load %arg6[%c0_11, %c0_12] : memref<16x10xf32, #tpu.memory_space<vmem>>, vector<16x10xf32>
    tpu.vector_store %arg6[%c0_11, %c0_12], %15 {strides = array<i32>} : memref<16x10xf32, #tpu.memory_space<vmem>>, vector<16x10xf32>,
    return
  }
  func.func @transform_0(%arg0: i32) -> (i32, i32) {
    %c0_i32 = arith.constant 0 : i32
    %c0_i32_0 = arith.constant 0 : i32
    return %arg0, %c0_i32 : i32, i32
  }
  func.func @transform_1(%arg0: i32) -> (i32, i32) {
    %c0_i32 = arith.constant 0 : i32
    %c0_i32_0 = arith.constant 0 : i32
    %c0_i32_1 = arith.constant 0 : i32
    return %c0_i32, %c0_i32_0 : i32, i32
  }
  func.func @transform_2(%arg0: i32) -> (i32, i32) {
    %c0_i32 = arith.constant 0 : i32
    %c0_i32_0 = arith.constant 0 : i32
    %c0_i32_1 = arith.constant 0 : i32
    return %c0_i32, %c0_i32_0 : i32, i32
  }
  func.func @transform_3(%arg0: i32) -> (i32, i32) {
    %c0_i32 = arith.constant 0 : i32
    %c0_i32_0 = arith.constant 0 : i32
    %c0_i32_1 = arith.constant 0 : i32
    return %c0_i32, %c0_i32_0 : i32, i32
  }
  func.func @transform_4(%arg0: i32) -> (i32, i32) {
    %c0_i32 = arith.constant 0 : i32
    %c0_i32_0 = arith.constant 0 : i32
    %c0_i32_1 = arith.constant 0 : i32
    return %c0_i32, %c0_i32_0 : i32, i32
  }
  func.func @transform_5(%arg0: i32) -> (i32, i32) {
    %c0_i32 = arith.constant 0 : i32
    %c0_i32_0 = arith.constant 0 : i32
    return %arg0, %c0_i32 : i32, i32
  }
}

module attributes {stable_mosaic.version = 11 : i64} {
  func.func @mlp_kernel(%arg0: i32, %arg1: memref<16x784xf32, #tpu.memory_space<vmem>>, %arg2: memref<784x128xbf16, #tpu.memory_space<vmem>>, %arg3: memref<1x128xf32, #tpu.memory_space<vmem>>, %arg4: memref<128x128xbf16, #tpu.memory_space<vmem>>, %arg5: memref<1x10xf32, #tpu.memory_space<vmem>>, %arg6: memref<16x10xf32, #tpu.memory_space<vmem>>) attributes {dimension_semantics = [#tpu.dimension_semantics<parallel>], iteration_bounds = array<i64: 1>, scalar_prefetch = 0 : i64, scratch_operands = 0 : i64, tpu.core_type = #tpu.core_type<tc>, window_params = [{transform_indices = @transform_0, window_bounds = array<i64: 16, 784>}, {pipeline_mode = #tpu.pipeline_mode<synchronous>, transform_indices = @transform_1, window_bounds = array<i64: 784, 128>}, {pipeline_mode = #tpu.pipeline_mode<synchronous>, transform_indices = @transform_2, window_bounds = array<i64: 1, 128>}, {pipeline_mode = #tpu.pipeline_mode<synchronous>, transform_indices = @transform_3, window_bounds = array<i64: 128, 128>}, {pipeline_mode = #tpu.pipeline_mode<synchronous>, transform_indices = @transform_4, window_bounds = array<i64: 1, 10>}, {transform_indices = @transform_5, window_bounds = array<i64: 16, 10>}]} {
    %c0 = arith.constant 0 : index
    %c0_0 = arith.constant 0 : index
    %0 = vector.load %arg1[%c0, %c0_0] : memref<16x784xf32, #tpu.memory_space<vmem>>, vector<16x784xf32>
    %1 = arith.truncf %0 : vector<16x784xf32> to vector<16x784xbf16>
    %c0_1 = arith.constant 0 : index
    %c0_2 = arith.constant 0 : index
    %2 = vector.load %arg2[%c0_1, %c0_2] : memref<784x128xbf16, #tpu.memory_space<vmem>>, vector<784x128xbf16>
    %cst = arith.constant dense<0.000000e+00> : vector<16x128xf32>
    %3 = tpu.matmul %1, %2, %cst {dimension_numbers = #tpu.dot_dimension_numbers<[1], [0], [0], [1], [0, 0, 1, 1], [], []>} : vector<16x784xbf16>, vector<784x128xbf16>, vector<16x128xf32> -> vector<16x128xf32>
    %c0_3 = arith.constant 0 : index
    %c0_4 = arith.constant 0 : index
    %4 = vector.load %arg3[%c0_3, %c0_4] : memref<1x128xf32, #tpu.memory_space<vmem>>, vector<1x128xf32>
    %5 = vector.broadcast %4 : vector<1x128xf32> to vector<16x128xf32>
    %6 = arith.addf %3, %5 : vector<16x128xf32>
    %cst_5 = arith.constant 0.000000e+00 : f32
    %7 = vector.broadcast %cst_5 : f32 to vector<16x128xf32>
    %8 = arith.maximumf %6, %7 : vector<16x128xf32>
    %9 = arith.truncf %8 : vector<16x128xf32> to vector<16x128xbf16>
    %c0_6 = arith.constant 0 : index
    %c0_7 = arith.constant 0 : index
    %10 = vector.load %arg4[%c0_6, %c0_7] : memref<128x128xbf16, #tpu.memory_space<vmem>>, vector<128x128xbf16>
    %cst_8 = arith.constant dense<0.000000e+00> : vector<16x128xf32>
    %11 = tpu.matmul %9, %10, %cst_8 {dimension_numbers = #tpu.dot_dimension_numbers<[1], [0], [0], [1], [0, 0, 1, 1], [], []>} : vector<16x128xbf16>, vector<128x128xbf16>, vector<16x128xf32> -> vector<16x128xf32>
    %12 = vector.extract_strided_slice %11 {offsets = [0, 0], sizes = [16, 10], strides = [1, 1]} : vector<16x128xf32> to vector<16x10xf32>
    %c0_9 = arith.constant 0 : index
    %c0_10 = arith.constant 0 : index
    %13 = vector.load %arg5[%c0_9, %c0_10] : memref<1x10xf32, #tpu.memory_space<vmem>>, vector<1x10xf32>
    %14 = vector.broadcast %13 : vector<1x10xf32> to vector<16x10xf32>
    %15 = arith.addf %12, %14 : vector<16x10xf32>
    %c0_11 = arith.constant 0 : index
    %c0_12 = arith.constant 0 : index
    %16 = vector.load %arg6[%c0_11, %c0_12] : memref<16x10xf32, #tpu.memory_space<vmem>>, vector<16x10xf32>
    tpu.vector_store %arg6[%c0_11, %c0_12], %15 {strides = array<i32>} : memref<16x10xf32, #tpu.memory_space<vmem>>, vector<16x10xf32>,
    return
  }
  func.func @transform_0(%arg0: i32) -> (i32, i32) {
    %c0_i32 = arith.constant 0 : i32
    %c0_i32_0 = arith.constant 0 : i32
    return %arg0, %c0_i32 : i32, i32
  }
  func.func @transform_1(%arg0: i32) -> (i32, i32) {
    %c0_i32 = arith.constant 0 : i32
    %c0_i32_0 = arith.constant 0 : i32
    %c0_i32_1 = arith.constant 0 : i32
    return %c0_i32, %c0_i32_0 : i32, i32
  }
  func.func @transform_2(%arg0: i32) -> (i32, i32) {
    %c0_i32 = arith.constant 0 : i32
    %c0_i32_0 = arith.constant 0 : i32
    %c0_i32_1 = arith.constant 0 : i32
    return %c0_i32, %c0_i32_0 : i32, i32
  }
  func.func @transform_3(%arg0: i32) -> (i32, i32) {
    %c0_i32 = arith.constant 0 : i32
    %c0_i32_0 = arith.constant 0 : i32
    %c0_i32_1 = arith.constant 0 : i32
    return %c0_i32, %c0_i32_0 : i32, i32
  }
  func.func @transform_4(%arg0: i32) -> (i32, i32) {
    %c0_i32 = arith.constant 0 : i32
    %c0_i32_0 = arith.constant 0 : i32
    %c0_i32_1 = arith.constant 0 : i32
    return %c0_i32, %c0_i32_0 : i32, i32
  }
  func.func @transform_5(%arg0: i32) -> (i32, i32) {
    %c0_i32 = arith.constant 0 : i32
    %c0_i32_0 = arith.constant 0 : i32
    return %arg0, %c0_i32 : i32, i32
  }
}

</mosaic_0001>

<bundles_post_ra>
// kernel: tpu_custom_call.1
= control target key start
LH: loop header
LB: loop body
LE: loop exit
PB: predicated region body
PF: predicated region fallthrough
CT: control target
= control target key end

     0   :  { %10 = vsyncpa [#allocation3], 0  ;;  %s1230_s0 = inlined_call_operand.hbm [shape: f32[16,784], index: 0, kind: input, shape index: {}]   ;;  %s1231_s1 = inlined_call_operand.hbm [shape: bf16[784,128], index: 1, kind: input, shape index: {}]   ;;  %s1232_s2 = inlined_call_operand.vmem [shape: f32[1,128], index: 2, kind: input, shape index: {}]   ;;  %s1233_s3 = inlined_call_operand.hbm [shape: bf16[128,128], index: 3, kind: input, shape index: {}]   ;;  %s1234_s4 = inlined_call_operand.vmem [shape: f32[1,10], index: 4, kind: input, shape index: {}]   ;;  %s1235_s5 = inlined_call_operand.hbm [shape: f32[16,10], index: 5, kind: output, shape index: {}]  }
   0x1   :  { %11 = vsyncpa [#allocation6], 0 }
   0x2   :  { %12 = vsyncpa [#allocation4], 0  ;;  %s1115_s18 = smov [#allocation5]   ;;  %s1021_s22 = scalar_lea.hbm %s1231_s1, 6272 }
   0x3   :  { %s30_s19 = sshll.u32 %s1115_s18, 4  ;;  %p1022_p0 = scmp.ne.s32.totalorder %s1231_s1, %s1021_s22  ;;  %s31_s19 = int_to_ptr.vmem [resolvable:$true] %s30_s19 }
   0x4   :  { %p1025_p1 = scmp.lt.u32.totalorder %s1021_s22, %s1231_s1 }
   0x6   :  { %p1027_p2 = pnand %p1025_p1, %p1022_p0 }
   0x8   :  { %1030 = shalt.err (!%p1027_p2)
}
   0x9   :  { %s1031_s27 = scalar_lea.vmem %s31_s19, 6272  ;;  %p1036_p4 = scmp.lt.s32.totalorder %s31_s19, %s31_s19 }
   0xa   :  { %p1032_p3 = scmp.ne.s32.totalorder %s31_s19, %s1031_s27  ;;  %p1037_p5 = scmp.lt.s32.totalorder %s1031_s27, %s1031_s27 }
   0xc   :  { %p1038_p6 = por %p1037_p5, %p1036_p4 }
   0xe   :  { %p1039_p7 = pnand %p1038_p6, %p1032_p3 }
  0x10   :  { %1042 = shalt.err (!%p1039_p7)
}
  0x11   :  { %s1116_s28 = smov 64   ;;  %s1117_s29 = smov 4  }
  0x12   :  { %36 = dma.hbm_to_vmem [thread:$0]  %s1231_s1, 6272, %s31_s19, [#allocation6], %s1116_s28, %s1116_s28, %s1117_s29  }
  0x13   :  { %s1118_s7 = smov [#allocation2]   ;;  %s1043_s11 = scalar_lea.hbm %s1230_s0, 1792 }
  0x14   :  { %s18_s8 = sshll.u32 %s1118_s7, 4  ;;  %p1044_p8 = scmp.ne.s32.totalorder %s1230_s0, %s1043_s11  ;;  %s19_s8 = int_to_ptr.vmem [resolvable:$true] %s18_s8 }
  0x15   :  { %p1047_p9 = scmp.lt.u32.totalorder %s1043_s11, %s1230_s0 }
  0x17   :  { %p1049_p10 = pnand %p1047_p9, %p1044_p8 }
  0x19   :  { %1052 = shalt.err (!%p1049_p10)
}
  0x1a   :  { %s1053_s16 = scalar_lea.vmem %s19_s8, 1792  ;;  %p1058_p12 = scmp.lt.s32.totalorder %s19_s8, %s19_s8 }
  0x1b   :  { %p1054_p11 = scmp.ne.s32.totalorder %s19_s8, %s1053_s16  ;;  %p1059_p13 = scmp.lt.s32.totalorder %s1053_s16, %s1053_s16 }
  0x1d   :  { %p1060_p0 = por %p1059_p13, %p1058_p12 }
  0x1f   :  { %p1061_p1 = pnand %p1060_p0, %p1054_p11 }
  0x21   :  { %1064 = shalt.err (!%p1061_p1)
}
  0x22   :  { %s1119_s1 = smov 896   ;;  %s1120_s17 = smov 56  }
  0x23   :  { %24 = dma.hbm_to_vmem [thread:$0]  %s1230_s0, 1792, %s19_s8, [#allocation3], %s1119_s1, %s1119_s1, %s1120_s17  }
  0x24   :  { %s1121_s20 = smov [#allocation7]   ;;  %s1065_s24 = scalar_lea.hbm %s1233_s3, 1024 }
  0x25   :  { %s44_s21 = sshll.u32 %s1121_s20, 4  ;;  %p1066_p2 = scmp.ne.s32.totalorder %s1233_s3, %s1065_s24  ;;  %s45_s21 = int_to_ptr.vmem [resolvable:$true] %s44_s21 }
  0x26   :  { %p1069_p3 = scmp.lt.u32.totalorder %s1065_s24, %s1233_s3 }
  0x28   :  { %p1071_p4 = pnand %p1069_p3, %p1066_p2 }
  0x2a   :  { %1074 = shalt.err (!%p1071_p4)
}
  0x2b   :  { %s1075_s6 = scalar_lea.vmem %s45_s21, 1024  ;;  %p1080_p6 = scmp.lt.s32.totalorder %s45_s21, %s45_s21 }
  0x2c   :  { %p1076_p5 = scmp.ne.s32.totalorder %s45_s21, %s1075_s6  ;;  %p1081_p7 = scmp.lt.s32.totalorder %s1075_s6, %s1075_s6 }
  0x2e   :  { %p1082_p8 = por %p1081_p7, %p1080_p6 }
  0x30   :  { %p1083_p9 = pnand %p1082_p8, %p1076_p5 }
  0x32   :  { %1086 = shalt.err (!%p1083_p9)
}
  0x33   :  { %50 = dma.hbm_to_vmem [thread:$0]  %s1233_s3, 1024, %s45_s21, [#allocation6], %s1116_s28, %s1116_s28, %s1117_s29  }
  0x34   :  { %1109 = dma.done.wait [#allocation3], 1792  }
  0x35   :  { %1110 = vsyncadd [#allocation3], 4294965504 }
  0x36   :  { %1111 = dma.done.wait [#allocation6], 7296  }
  0x37   :  { %1112 = vsyncadd [#allocation6], 4294960000  ;;  %v964_v0 = vld [vmem:[#allocation5 + $0x40] sm:$0xff]   ;;  %v968_v4 = vld [vmem:[#allocation5 + $0x48] sm:$0xff]   ;;  %v1122_v43 = vmov 0.0   ;;  %vm1123_vm0 = vmmov 0  }
  0x38   :  { %v965_v1 = vld [vmem:[#allocation5] sm:$0xff]   ;;  %849 = vmatprep.subr.bf16.mxu0 %v964_v0  ;;  %v969_v5 = vld [vmem:[#allocation5 + $0x8] sm:$0xff]   ;;  %v972_v8 = vld [vmem:[#allocation5 + $0x50] sm:$0xff]   ;;  %vm483_vm1 = vcmask 130048   ;;  %vm768_vm2 = vcmask 80896   ;;  %s1124_s8 = smov [#allocation8]  }
  0x39   :  { %v966_v2 = vld [vmem:[#allocation5 + $0xc0] sm:$0xff]   ;;  %850 = vmatpush3.bf16.msra.mxu0 %v965_v1  ;;  %v970_v6 = vld [vmem:[#allocation5 + $0xc8] sm:$0xff]   ;;  %v973_v9 = vld [vmem:[#allocation5 + $0x10] sm:$0xff]   ;;  %s776_s9 = sshll.u32 %s1124_s8, 4  ;;  %s777_s9 = int_to_ptr.vmem [resolvable:$true] %s776_s9 }
  0x3a   :  { %v967_v3 = vld [vmem:[#allocation5 + $0x80] sm:$0xff]   ;;  %871 = vmatprep.subr.bf16.mxu1 %v966_v2  ;;  %851 = vmatprep.subr.bf16.mxu0 %v968_v4  ;;  %v971_v7 = vld [vmem:[#allocation5 + $0x88] sm:$0xff]   ;;  %v974_v10 = vld [vmem:[#allocation5 + $0xd0] sm:$0xff]   ;;  %s1087_s10 = scalar_lea.vmem %s777_s9, 256  ;;  %p1092_p11 = scmp.lt.s32.totalorder %s777_s9, %s777_s9 }
  0x3b   :  { %872 = vmatpush3.bf16.msra.mxu1 %v967_v3  ;;  %v975_v11 = vld [vmem:[#allocation5 + $0x90] sm:$0xff]   ;;  %v976_v12 = vld [vmem:[#allocation5 + $0x58] sm:$0xff]   ;;  %v980_v16 = vld [vmem:[#allocation5 + $0x60] sm:$0xff]   ;;  %p1088_p10 = scmp.ne.s32.totalorder %s777_s9, %s1087_s10  ;;  %p1093_p12 = scmp.lt.s32.totalorder %s1087_s10, %s1087_s10 }
  0x3c   :  { %873 = vmatprep.subr.bf16.mxu1 %v970_v6  ;;  %v977_v13 = vld [vmem:[#allocation5 + $0x18] sm:$0xff]   ;;  %v981_v17 = vld [vmem:[#allocation5 + $0x20] sm:$0xff]   ;;  %v984_v20 = vld [vmem:[#allocation5 + $0x68] sm:$0xff]  }
  0x3d   :  { %852 = vmatpush3.bf16.msra.mxu0 %v969_v5  ;;  %v978_v14 = vld [vmem:[#allocation5 + $0xd8] sm:$0xff]   ;;  %v982_v18 = vld [vmem:[#allocation5 + $0xe0] sm:$0xff]   ;;  %v985_v21 = vld [vmem:[#allocation5 + $0x28] sm:$0xff]   ;;  %p1094_p13 = por %p1093_p12, %p1092_p11 }
  0x3e   :  { %853 = vmatprep.subr.bf16.mxu0 %v972_v8  ;;  %v979_v15 = vld [vmem:[#allocation5 + $0x98] sm:$0xff]   ;;  %v983_v19 = vld [vmem:[#allocation5 + $0xa0] sm:$0xff]   ;;  %v986_v22 = vld [vmem:[#allocation5 + $0xe8] sm:$0xff]  }
  0x3f   :  { %874 = vmatpush3.bf16.msra.mxu1 %v971_v7  ;;  %v987_v23 = vld [vmem:[#allocation5 + $0xa8] sm:$0xff]   ;;  %v988_v24 = vld [vmem:[#allocation5 + $0x70] sm:$0xff]   ;;  %v992_v28 = vld [vmem:[#allocation5 + $0x78] sm:$0xff]   ;;  %p1095_p0 = pnand %p1094_p13, %p1088_p10 }
  0x40   :  { %875 = vmatprep.subr.bf16.mxu1 %v974_v10  ;;  %v989_v25 = vld [vmem:[#allocation5 + $0x30] sm:$0xff]   ;;  %v993_v29 = vld [vmem:[#allocation5 + $0x38] sm:$0xff]   ;;  %v70_v36 = vld [vmem:[#allocation2 + $0x38] sm:$0xff] }
  0x41   :  { %854 = vmatpush3.bf16.msra.mxu0 %v973_v9  ;;  %v990_v26 = vld [vmem:[#allocation5 + $0xf0] sm:$0xff]   ;;  %v994_v30 = vld [vmem:[#allocation5 + $0xf8] sm:$0xff]   ;;  %v996_v38 = vld [vmem:[#allocation5 + $0x140] sm:$0xff]  }
  0x42   :  { %855 = vmatprep.subr.bf16.mxu0 %v976_v12  ;;  %v991_v27 = vld [vmem:[#allocation5 + $0xb0] sm:$0xff]   ;;  %v64_v31 = vld [vmem:[#allocation2 + $0x8] sm:$0xff]  ;;  %v66_v39 = vld [vmem:[#allocation2 + $0x18] sm:$0xff] }
  0x43   :  { %876 = vmatpush3.bf16.msra.mxu1 %v975_v11  ;;  %v71_v32 = vld [vmem:[#allocation2 + $0x40] sm:$0xff]  ;;  %v995_v34 = vld [vmem:[#allocation5 + $0xb8] sm:$0xff]   ;;  %v73_v40 = vld [vmem:[#allocation2 + $0x50] sm:$0xff] }
  0x44   :  { %877 = vmatprep.subr.bf16.mxu1 %v978_v14  ;;  %v78_v33 = vpack.c.bf16 %v71_v32, %v64_v31  ;;  %v63_v35 = vld [vmem:[#allocation2] sm:$0xff]  ;;  %v80_v41 = vpack.c.bf16 %v73_v40, %v66_v39  ;;  %v997_v42 = vld [vmem:[#allocation5 + $0x100] sm:$0xff]   ;;  %v72_v45 = vld [vmem:[#allocation2 + $0x48] sm:$0xff] }
  0x45   :  { %856 = vmatpush3.bf16.msra.mxu0 %v977_v13  ;;  %v77_v37 = vpack.c.bf16 %v70_v36, %v63_v35  ;;  %v65_v44 = vld [vmem:[#allocation2 + $0x10] sm:$0xff]  ;;  %v998_v47 = vld [vmem:[#allocation5 + $0x148] sm:$0xff]   ;;  %v1000_v49 = vld [vmem:[#allocation5 + $0x150] sm:$0xff]  }
  0x46   :  { %857 = vmatprep.subr.bf16.mxu0 %v980_v16  ;;  %519 = vmatprep.mubr.bf16.mxu0 %v78_v33  ;;  %v79_v46 = vpack.c.bf16 %v72_v45, %v65_v44  ;;  %v999_v48 = vld [vmem:[#allocation5 + $0x108] sm:$0xff]   ;;  %v1001_v50 = vld [vmem:[#allocation5 + $0x110] sm:$0xff]   ;;  %v1002_v51 = vld [vmem:[#allocation5 + $0x158] sm:$0xff]  }
  0x47   :  { %878 = vmatpush3.bf16.msra.mxu1 %v979_v15  ;;  %560 = vmatprep.mubr.bf16.mxu1 %v80_v41  ;;  %v1003_v52 = vld [vmem:[#allocation5 + $0x118] sm:$0xff]   ;;  %v1004_v53 = vld [vmem:[#allocation5 + $0x160] sm:$0xff]   ;;  %v1006_v55 = vld [vmem:[#allocation5 + $0x168] sm:$0xff]  }
  0x48   :  { %879 = vmatprep.subr.bf16.mxu1 %v982_v18  ;;  %v1005_v54 = vld [vmem:[#allocation5 + $0x120] sm:$0xff]   ;;  %v68_v57 = vld [vmem:[#allocation2 + $0x28] sm:$0xff]  ;;  %v1007_v58 = vld [vmem:[#allocation5 + $0x128] sm:$0xff]  }
  0x49   :  { %858 = vmatpush3.bf16.msra.mxu0 %v981_v17  ;;  %v1012_v56 = vld [vmem:[#allocation5 + $0x180] sm:$0xff]   ;;  %v1008_v59 = vld [vmem:[#allocation5 + $0x170] sm:$0xff]   ;;  %v76_v63 = vld [vmem:[#allocation2 + $0x68] sm:$0xff] }
  0x4a   :  { %859 = vmatprep.subr.bf16.mxu0 %v984_v20  ;;  %v75_v60 = vld [vmem:[#allocation2 + $0x60] sm:$0xff]  ;;  %v69_v62 = vld [vmem:[#allocation2 + $0x30] sm:$0xff]  ;;  %v1010_v2 = vld [vmem:[#allocation5 + $0x178] sm:$0xff]  }
  0x4b   :  { %880 = vmatpush3.bf16.msra.mxu1 %v983_v19  ;;  %v82_v61 = vpack.c.bf16 %v75_v60, %v68_v57  ;;  %v83_v0 = vpack.c.bf16 %v76_v63, %v69_v62  ;;  %v1009_v1 = vld [vmem:[#allocation5 + $0x130] sm:$0xff]   ;;  %v1011_v3 = vld [vmem:[#allocation5 + $0x138] sm:$0xff]   ;;  %v74_v5 = vld [vmem:[#allocation2 + $0x58] sm:$0xff] }
  0x4c   :  { %881 = vmatprep.subr.bf16.mxu1 %v986_v22  ;;  %v67_v4 = vld [vmem:[#allocation2 + $0x20] sm:$0xff]  ;;  %v1013_v7 = vld [vmem:[#allocation7] sm:$0xff]   ;;  %v1015_v9 = vld [vmem:[#allocation7 + $0x10] sm:$0xff]  }
  0x4d   :  { %860 = vmatpush3.bf16.msra.mxu0 %v985_v21  ;;  %v81_v6 = vpack.c.bf16 %v74_v5, %v67_v4  ;;  %v1014_v8 = vld [vmem:[#allocation7 + $0x8] sm:$0xff]   ;;  %v1016_v10 = vld [vmem:[#allocation7 + $0x18] sm:$0xff]   ;;  %v1017_v11 = vld [vmem:[#allocation7 + $0x20] sm:$0xff]  }
  0x4e   :  { %861 = vmatprep.subr.bf16.mxu0 %v988_v24  ;;  %v1018_v12 = vld [vmem:[#allocation7 + $0x28] sm:$0xff]   ;;  %v1019_v13 = vld [vmem:[#allocation7 + $0x30] sm:$0xff]   ;;  %v1020_v14 = vld [vmem:[#allocation7 + $0x38] sm:$0xff]  }
  0x4f   :  { %882 = vmatpush3.bf16.msra.mxu1 %v987_v23  ;;  %v789_v16 = vld [vmem:[%s1232_s2] ss:$0 sm:$0xff] }
  0x50   :  { %883 = vmatprep.subr.bf16.mxu1 %v990_v26 }
  0x51   :  { %862 = vmatpush3.bf16.msra.mxu0 %v989_v25 }
  0x52   :  { %863 = vmatprep.subr.bf16.mxu0 %v992_v28 }
  0x53   :  { %884 = vmatpush3.bf16.msra.mxu1 %v991_v27 }
  0x54   :  { %885 = vmatprep.subr.bf16.mxu1 %v994_v30 }
  0x55   :  { %864 = vmatpush3.bf16.msra.mxu0 %v993_v29 }
  0x56   :  { %893 = vmatprep.subr.bf16.mxu0 %v996_v38 }
  0x57   :  { %886 = vmatpush3.bf16.msra.mxu1 %v995_v34 }
  0x58   :  { %926 = vmatprep.subr.bf16.mxu1 %v1122_v43  ;;  %520 = vmatmul.mubr.bf16.vlgmr.msra.gmra.mrb[0].mxu0 %v77_v37 }
  0x59   :  { %894 = vmatpush3.bf16.msra.mxu0 %v997_v42  ;;  %601 = vmatprep.mubr.bf16.mxu0 %v82_v61 }
  0x5a   :  { %561 = vmatmul.mubr.bf16.vlgmr.msra.gmra.mrb[0].mxu1 %v79_v46  ;;  %895 = vmatprep.subr.bf16.mxu0 %v998_v47 }
  0x5b   :  { %928 = vmatprep.mubr.msk.bf16.mxu1 %vm1123_vm0, %v1122_v43  ;;  %927 = vmatpush3.bf16.msra.mxu1 %v1012_v56 }
  0x5c   :  { %932 = vmatprep.subr.bf16.mxu1 %v1122_v43 }
  0x5d   :  { %896 = vmatpush3.bf16.msra.mxu0 %v999_v48 }
  0x5e   :  { %897 = vmatprep.subr.bf16.mxu0 %v1000_v49  ;;  %v848_v49 = vld [vmem:[%s1234_s4] ss:$0 sm:$0xff] }
  0x61   :  { %898 = vmatpush3.bf16.msra.mxu0 %v1001_v50 }
  0x62   :  { %899 = vmatprep.subr.bf16.mxu0 %v1002_v51  ;;  %929 = vmatmul.mubr.msk.bf16.vlgmr.msra.gmra.mrb[4].mxu1 %vm483_vm1, %v83_v0 }
  0x63   :  { %948 = vmatprep.mubr.msk.bf16.mxu1 %vm1123_vm0, %v1122_v43  ;;  %933 = vmatpush3.bf16.msra.mxu1 %v1013_v7 }
  0x64   :  { %934 = vmatprep.subr.bf16.mxu1 %v1122_v43 }
  0x65   :  { %900 = vmatpush3.bf16.msra.mxu0 %v1003_v52 }
  0x66   :  { %901 = vmatprep.subr.bf16.mxu0 %v1004_v53 }
  0x67   :  { %935 = vmatpush3.bf16.msra.mxu1 %v1014_v8 }
  0x68   :  { %936 = vmatprep.subr.bf16.mxu1 %v1122_v43 }
  0x69   :  { %902 = vmatpush3.bf16.msra.mxu0 %v1005_v54 }
  0x6a   :  { %903 = vmatprep.subr.bf16.mxu0 %v1006_v55 }
  0x6b   :  { %937 = vmatpush3.bf16.msra.mxu1 %v1015_v9 }
  0x6c   :  { %938 = vmatprep.subr.bf16.mxu1 %v1122_v43 }
  0x6d   :  { %904 = vmatpush3.bf16.msra.mxu0 %v1007_v58 }
  0x6e   :  { %905 = vmatprep.subr.bf16.mxu0 %v1008_v59 }
  0x6f   :  { %939 = vmatpush3.bf16.msra.mxu1 %v1016_v10 }
  0x70   :  { %940 = vmatprep.subr.bf16.mxu1 %v1122_v43 }
  0x71   :  { %906 = vmatpush3.bf16.msra.mxu0 %v1009_v1 }
  0x72   :  { %907 = vmatprep.subr.bf16.mxu0 %v1010_v2 }
  0x73   :  { %941 = vmatpush3.bf16.msra.mxu1 %v1017_v11 }
  0x74   :  { %942 = vmatprep.subr.bf16.mxu1 %v1122_v43 }
  0x75   :  { %908 = vmatpush3.bf16.msra.mxu0 %v1011_v3 }
  0x77   :  { %943 = vmatpush3.bf16.msra.mxu1 %v1018_v12 }
  0x78   :  { %602 = vmatmul.mubr.bf16.vlgmr.msra.gmra.mrb[4].mxu0 %v81_v6  ;;  %944 = vmatprep.subr.bf16.mxu1 %v1122_v43 }
  0x7b   :  { %945 = vmatpush3.bf16.msra.mxu1 %v1019_v13 }
  0x7c   :  { %946 = vmatprep.subr.bf16.mxu1 %v1122_v43 }
  0x7f   :  { %947 = vmatpush3.bf16.msra.mxu1 %v1020_v14 }
 0x12b   :  { %v865_v15 = vpop.f32.mrb[0].mxu0 }
 0x12c   :  { %v866_v17 = vpop.f32.mrb[1].mxu0 }
 0x12d   :  { %v867_v18 = vadd.f32 %v866_v17, %v865_v15  ;;  %v868_v19 = vpop.f32.mrb[2].mxu0  ;;  %v887_v20 = vpop.f32.mrb[0].mxu1 }
 0x12e   :  { %v869_v21 = vpop.f32.mrb[3].mxu0  ;;  %v888_v24 = vpop.f32.mrb[1].mxu1 }
 0x12f   :  { %v522_v22 = vadd.f32 %v867_v18, %v789_v16  ;;  %v870_v23 = vadd.f32 %v869_v21, %v868_v19  ;;  %v889_v25 = vadd.f32 %v888_v24, %v887_v20  ;;  %v890_v26 = vpop.f32.mrb[2].mxu1 }
 0x130   :  { %v891_v28 = vpop.f32.mrb[3].mxu1 }
 0x131   :  { %v525_v27 = vadd.f32 %v870_v23, %v789_v16  ;;  %v563_v29 = vadd.f32 %v889_v25, %v522_v22  ;;  %v892_v30 = vadd.f32 %v891_v28, %v890_v26 }
 0x133   :  { %v566_v31 = vadd.f32 %v892_v30, %v525_v27 }
 0x135   :  { %v644_v32 = vpop.f32.mrb[4].mxu1 }
 0x136   :  { %v930_v33 = vpop.f32.mrb[5].mxu1 }
 0x137   :  { %v647_v34 = vpop.f32.mrb[6].mxu1 }
 0x138   :  { %v931_v35 = vpop.f32.mrb[7].mxu1 }
 0x14b   :  { %v909_v36 = vpop.f32.mrb[4].mxu0 }
 0x14c   :  { %v910_v37 = vpop.f32.mrb[5].mxu0 }
 0x14d   :  { %v911_v38 = vadd.f32 %v910_v37, %v909_v36  ;;  %v912_v39 = vpop.f32.mrb[6].mxu0 }
 0x14e   :  { %v913_v40 = vpop.f32.mrb[7].mxu0 }
 0x14f   :  { %v604_v41 = vadd.f32 %v911_v38, %v563_v29  ;;  %v914_v42 = vadd.f32 %v913_v40, %v912_v39 }
 0x151   :  { %v645_v43 = vadd.f32 %v644_v32, %v604_v41  ;;  %v607_v44 = vadd.f32 %v914_v42, %v566_v31 }
 0x153   :  { %v648_v45 = vadd.f32 %v647_v34, %v607_v44  ;;  %v651_v46 = vmax.f32 %v645_v43, 0.0 }
 0x155   :  { %v652_v47 = vmax.f32 %v648_v45, 0.0 }
 0x157   :  { %v653_v48 = vpack.c.bf16 %v652_v47, %v651_v46 }
 0x159   :  { %949 = vmatmul.mubr.bf16.vlgmr.msra.gmra.mrb[8].mxu1 %v653_v48 }
 0x22c   :  { %v752_v50 = vpop.f32.mrb[8].mxu1 }
 0x22d   :  { %v766_v51 = vadd.f32 %v848_v49, %v752_v50  ;;  %v950_v52 = vpop.f32.mrb[9].mxu1 }
 0x22e   :  { %v755_v53 = vpop.f32.mrb[10].mxu1 }
 0x22f   :  { %769 = vst.msk [vmem:[#allocation8] sm:$0xff] %vm768_vm2, %v766_v51  ;;  %v767_v54 = vadd.f32 %v848_v49, %v755_v53  ;;  %v951_v55 = vpop.f32.mrb[11].mxu1 }
 0x231   :  { %770 = vst.msk [vmem:[#allocation8 + $0x8] sm:$0xff] %vm768_vm2, %v767_v54 }
 0x232   :  { %1098 = shalt.err (!%p1095_p0)
}
 0x233   :  { %s1099_s12 = scalar_lea.hbm %s1235_s5, 256 }
 0x234   :  { %p1100_p1 = scmp.ne.s32.totalorder %s1235_s5, %s1099_s12  ;;  %p1103_p2 = scmp.lt.u32.totalorder %s1099_s12, %s1235_s5 }
 0x236   :  { %p1105_p3 = pnand %p1103_p2, %p1100_p1 }
 0x238   :  { %1108 = shalt.err (!%p1105_p3)
}
 0x239   :  { %s1125_s1 = smov 128   ;;  %s1126_s17 = smov 8  }
 0x23a   :  { %782 = dma.vmem_to_hbm [thread:$0]  %s777_s9, 256, %s1235_s5, [#allocation4], %s1125_s1, %s1125_s1, %s1126_s17  }
 0x23b   :  { %1113 = dma.done.wait [#allocation4], 256  }
 0x23c   :  { %1114 = vsyncadd [#allocation4], 4294967040 }
 0x23d   :  { %786 = vsyncpa [#allocation3], 1 }
 0x23e   :  { %787 = vsyncpa [#allocation6], 1 }
 0x23f   :  { %788 = vsyncpa [#allocation4], 1 }

// kernel: tpu_custom_call.1
= control target key start
LH: loop header
LB: loop body
LE: loop exit
PB: predicated region body
PF: predicated region fallthrough
CT: control target
= control target key end

     0   :  { %10 = vsyncpa [#allocation3], 0  ;;  %s1230_s0 = inlined_call_operand.hbm [shape: f32[16,784], index: 0, kind: input, shape index: {}]   ;;  %s1231_s1 = inlined_call_operand.hbm [shape: bf16[784,128], index: 1, kind: input, shape index: {}]   ;;  %s1232_s2 = inlined_call_operand.vmem [shape: f32[1,128], index: 2, kind: input, shape index: {}]   ;;  %s1233_s3 = inlined_call_operand.hbm [shape: bf16[128,128], index: 3, kind: input, shape index: {}]   ;;  %s1234_s4 = inlined_call_operand.vmem [shape: f32[1,10], index: 4, kind: input, shape index: {}]   ;;  %s1235_s5 = inlined_call_operand.hbm [shape: f32[16,10], index: 5, kind: output, shape index: {}]  }
   0x1   :  { %11 = vsyncpa [#allocation6], 0 }
   0x2   :  { %12 = vsyncpa [#allocation4], 0  ;;  %s1115_s18 = smov [#allocation5]   ;;  %s1021_s22 = scalar_lea.hbm %s1231_s1, 6272 }
   0x3   :  { %s30_s19 = sshll.u32 %s1115_s18, 4  ;;  %p1022_p0 = scmp.ne.s32.totalorder %s1231_s1, %s1021_s22  ;;  %s31_s19 = int_to_ptr.vmem [resolvable:$true] %s30_s19 }
   0x4   :  { %p1025_p1 = scmp.lt.u32.totalorder %s1021_s22, %s1231_s1 }
   0x6   :  { %p1027_p2 = pnand %p1025_p1, %p1022_p0 }
   0x8   :  { %1030 = shalt.err (!%p1027_p2)
}
   0x9   :  { %s1031_s27 = scalar_lea.vmem %s31_s19, 6272  ;;  %p1036_p4 = scmp.lt.s32.totalorder %s31_s19, %s31_s19 }
   0xa   :  { %p1032_p3 = scmp.ne.s32.totalorder %s31_s19, %s1031_s27  ;;  %p1037_p5 = scmp.lt.s32.totalorder %s1031_s27, %s1031_s27 }
   0xc   :  { %p1038_p6 = por %p1037_p5, %p1036_p4 }
   0xe   :  { %p1039_p7 = pnand %p1038_p6, %p1032_p3 }
  0x10   :  { %1042 = shalt.err (!%p1039_p7)
}
  0x11   :  { %s1116_s28 = smov 64   ;;  %s1117_s29 = smov 4  }
  0x12   :  { %36 = dma.hbm_to_vmem [thread:$0]  %s1231_s1, 6272, %s31_s19, [#allocation6], %s1116_s28, %s1116_s28, %s1117_s29  }
  0x13   :  { %s1118_s7 = smov [#allocation2]   ;;  %s1043_s11 = scalar_lea.hbm %s1230_s0, 1792 }
  0x14   :  { %s18_s8 = sshll.u32 %s1118_s7, 4  ;;  %p1044_p8 = scmp.ne.s32.totalorder %s1230_s0, %s1043_s11  ;;  %s19_s8 = int_to_ptr.vmem [resolvable:$true] %s18_s8 }
  0x15   :  { %p1047_p9 = scmp.lt.u32.totalorder %s1043_s11, %s1230_s0 }
  0x17   :  { %p1049_p10 = pnand %p1047_p9, %p1044_p8 }
  0x19   :  { %1052 = shalt.err (!%p1049_p10)
}
  0x1a   :  { %s1053_s16 = scalar_lea.vmem %s19_s8, 1792  ;;  %p1058_p12 = scmp.lt.s32.totalorder %s19_s8, %s19_s8 }
  0x1b   :  { %p1054_p11 = scmp.ne.s32.totalorder %s19_s8, %s1053_s16  ;;  %p1059_p13 = scmp.lt.s32.totalorder %s1053_s16, %s1053_s16 }
  0x1d   :  { %p1060_p0 = por %p1059_p13, %p1058_p12 }
  0x1f   :  { %p1061_p1 = pnand %p1060_p0, %p1054_p11 }
  0x21   :  { %1064 = shalt.err (!%p1061_p1)
}
  0x22   :  { %s1119_s1 = smov 896   ;;  %s1120_s17 = smov 56  }
  0x23   :  { %24 = dma.hbm_to_vmem [thread:$0]  %s1230_s0, 1792, %s19_s8, [#allocation3], %s1119_s1, %s1119_s1, %s1120_s17  }
  0x24   :  { %s1121_s20 = smov [#allocation7]   ;;  %s1065_s24 = scalar_lea.hbm %s1233_s3, 1024 }
  0x25   :  { %s44_s21 = sshll.u32 %s1121_s20, 4  ;;  %p1066_p2 = scmp.ne.s32.totalorder %s1233_s3, %s1065_s24  ;;  %s45_s21 = int_to_ptr.vmem [resolvable:$true] %s44_s21 }
  0x26   :  { %p1069_p3 = scmp.lt.u32.totalorder %s1065_s24, %s1233_s3 }
  0x28   :  { %p1071_p4 = pnand %p1069_p3, %p1066_p2 }
  0x2a   :  { %1074 = shalt.err (!%p1071_p4)
}
  0x2b   :  { %s1075_s6 = scalar_lea.vmem %s45_s21, 1024  ;;  %p1080_p6 = scmp.lt.s32.totalorder %s45_s21, %s45_s21 }
  0x2c   :  { %p1076_p5 = scmp.ne.s32.totalorder %s45_s21, %s1075_s6  ;;  %p1081_p7 = scmp.lt.s32.totalorder %s1075_s6, %s1075_s6 }
  0x2e   :  { %p1082_p8 = por %p1081_p7, %p1080_p6 }
  0x30   :  { %p1083_p9 = pnand %p1082_p8, %p1076_p5 }
  0x32   :  { %1086 = shalt.err (!%p1083_p9)
}
  0x33   :  { %50 = dma.hbm_to_vmem [thread:$0]  %s1233_s3, 1024, %s45_s21, [#allocation6], %s1116_s28, %s1116_s28, %s1117_s29  }
  0x34   :  { %1109 = dma.done.wait [#allocation3], 1792  }
  0x35   :  { %1110 = vsyncadd [#allocation3], 4294965504 }
  0x36   :  { %1111 = dma.done.wait [#allocation6], 7296  }
  0x37   :  { %1112 = vsyncadd [#allocation6], 4294960000  ;;  %v964_v0 = vld [vmem:[#allocation5 + $0x40] sm:$0xff]   ;;  %v968_v4 = vld [vmem:[#allocation5 + $0x48] sm:$0xff]   ;;  %v1122_v43 = vmov 0.0   ;;  %vm1123_vm0 = vmmov 0  }
  0x38   :  { %v965_v1 = vld [vmem:[#allocation5] sm:$0xff]   ;;  %849 = vmatprep.subr.bf16.mxu0 %v964_v0  ;;  %v969_v5 = vld [vmem:[#allocation5 + $0x8] sm:$0xff]   ;;  %v972_v8 = vld [vmem:[#allocation5 + $0x50] sm:$0xff]   ;;  %vm483_vm1 = vcmask 130048   ;;  %vm768_vm2 = vcmask 80896   ;;  %s1124_s8 = smov [#allocation8]  }
  0x39   :  { %v966_v2 = vld [vmem:[#allocation5 + $0xc0] sm:$0xff]   ;;  %850 = vmatpush3.bf16.msra.mxu0 %v965_v1  ;;  %v970_v6 = vld [vmem:[#allocation5 + $0xc8] sm:$0xff]   ;;  %v973_v9 = vld [vmem:[#allocation5 + $0x10] sm:$0xff]   ;;  %s776_s9 = sshll.u32 %s1124_s8, 4  ;;  %s777_s9 = int_to_ptr.vmem [resolvable:$true] %s776_s9 }
  0x3a   :  { %v967_v3 = vld [vmem:[#allocation5 + $0x80] sm:$0xff]   ;;  %871 = vmatprep.subr.bf16.mxu1 %v966_v2  ;;  %851 = vmatprep.subr.bf16.mxu0 %v968_v4  ;;  %v971_v7 = vld [vmem:[#allocation5 + $0x88] sm:$0xff]   ;;  %v974_v10 = vld [vmem:[#allocation5 + $0xd0] sm:$0xff]   ;;  %s1087_s10 = scalar_lea.vmem %s777_s9, 256  ;;  %p1092_p11 = scmp.lt.s32.totalorder %s777_s9, %s777_s9 }
  0x3b   :  { %872 = vmatpush3.bf16.msra.mxu1 %v967_v3  ;;  %v975_v11 = vld [vmem:[#allocation5 + $0x90] sm:$0xff]   ;;  %v976_v12 = vld [vmem:[#allocation5 + $0x58] sm:$0xff]   ;;  %v980_v16 = vld [vmem:[#allocation5 + $0x60] sm:$0xff]   ;;  %p1088_p10 = scmp.ne.s32.totalorder %s777_s9, %s1087_s10  ;;  %p1093_p12 = scmp.lt.s32.totalorder %s1087_s10, %s1087_s10 }
  0x3c   :  { %873 = vmatprep.subr.bf16.mxu1 %v970_v6  ;;  %v977_v13 = vld [vmem:[#allocation5 + $0x18] sm:$0xff]   ;;  %v981_v17 = vld [vmem:[#allocation5 + $0x20] sm:$0xff]   ;;  %v984_v20 = vld [vmem:[#allocation5 + $0x68] sm:$0xff]  }
  0x3d   :  { %852 = vmatpush3.bf16.msra.mxu0 %v969_v5  ;;  %v978_v14 = vld [vmem:[#allocation5 + $0xd8] sm:$0xff]   ;;  %v982_v18 = vld [vmem:[#allocation5 + $0xe0] sm:$0xff]   ;;  %v985_v21 = vld [vmem:[#allocation5 + $0x28] sm:$0xff]   ;;  %p1094_p13 = por %p1093_p12, %p1092_p11 }
  0x3e   :  { %853 = vmatprep.subr.bf16.mxu0 %v972_v8  ;;  %v979_v15 = vld [vmem:[#allocation5 + $0x98] sm:$0xff]   ;;  %v983_v19 = vld [vmem:[#allocation5 + $0xa0] sm:$0xff]   ;;  %v986_v22 = vld [vmem:[#allocation5 + $0xe8] sm:$0xff]  }
  0x3f   :  { %874 = vmatpush3.bf16.msra.mxu1 %v971_v7  ;;  %v987_v23 = vld [vmem:[#allocation5 + $0xa8] sm:$0xff]   ;;  %v988_v24 = vld [vmem:[#allocation5 + $0x70] sm:$0xff]   ;;  %v992_v28 = vld [vmem:[#allocation5 + $0x78] sm:$0xff]   ;;  %p1095_p0 = pnand %p1094_p13, %p1088_p10 }
  0x40   :  { %875 = vmatprep.subr.bf16.mxu1 %v974_v10  ;;  %v989_v25 = vld [vmem:[#allocation5 + $0x30] sm:$0xff]   ;;  %v993_v29 = vld [vmem:[#allocation5 + $0x38] sm:$0xff]   ;;  %v70_v36 = vld [vmem:[#allocation2 + $0x38] sm:$0xff] }
  0x41   :  { %854 = vmatpush3.bf16.msra.mxu0 %v973_v9  ;;  %v990_v26 = vld [vmem:[#allocation5 + $0xf0] sm:$0xff]   ;;  %v994_v30 = vld [vmem:[#allocation5 + $0xf8] sm:$0xff]   ;;  %v996_v38 = vld [vmem:[#allocation5 + $0x140] sm:$0xff]  }
  0x42   :  { %855 = vmatprep.subr.bf16.mxu0 %v976_v12  ;;  %v991_v27 = vld [vmem:[#allocation5 + $0xb0] sm:$0xff]   ;;  %v64_v31 = vld [vmem:[#allocation2 + $0x8] sm:$0xff]  ;;  %v66_v39 = vld [vmem:[#allocation2 + $0x18] sm:$0xff] }
  0x43   :  { %876 = vmatpush3.bf16.msra.mxu1 %v975_v11  ;;  %v71_v32 = vld [vmem:[#allocation2 + $0x40] sm:$0xff]  ;;  %v995_v34 = vld [vmem:[#allocation5 + $0xb8] sm:$0xff]   ;;  %v73_v40 = vld [vmem:[#allocation2 + $0x50] sm:$0xff] }
  0x44   :  { %877 = vmatprep.subr.bf16.mxu1 %v978_v14  ;;  %v78_v33 = vpack.c.bf16 %v71_v32, %v64_v31  ;;  %v63_v35 = vld [vmem:[#allocation2] sm:$0xff]  ;;  %v80_v41 = vpack.c.bf16 %v73_v40, %v66_v39  ;;  %v997_v42 = vld [vmem:[#allocation5 + $0x100] sm:$0xff]   ;;  %v72_v45 = vld [vmem:[#allocation2 + $0x48] sm:$0xff] }
  0x45   :  { %856 = vmatpush3.bf16.msra.mxu0 %v977_v13  ;;  %v77_v37 = vpack.c.bf16 %v70_v36, %v63_v35  ;;  %v65_v44 = vld [vmem:[#allocation2 + $0x10] sm:$0xff]  ;;  %v998_v47 = vld [vmem:[#allocation5 + $0x148] sm:$0xff]   ;;  %v1000_v49 = vld [vmem:[#allocation5 + $0x150] sm:$0xff]  }
  0x46   :  { %857 = vmatprep.subr.bf16.mxu0 %v980_v16  ;;  %519 = vmatprep.mubr.bf16.mxu0 %v78_v33  ;;  %v79_v46 = vpack.c.bf16 %v72_v45, %v65_v44  ;;  %v999_v48 = vld [vmem:[#allocation5 + $0x108] sm:$0xff]   ;;  %v1001_v50 = vld [vmem:[#allocation5 + $0x110] sm:$0xff]   ;;  %v1002_v51 = vld [vmem:[#allocation5 + $0x158] sm:$0xff]  }
  0x47   :  { %878 = vmatpush3.bf16.msra.mxu1 %v979_v15  ;;  %560 = vmatprep.mubr.bf16.mxu1 %v80_v41  ;;  %v1003_v52 = vld [vmem:[#allocation5 + $0x118] sm:$0xff]   ;;  %v1004_v53 = vld [vmem:[#allocation5 + $0x160] sm:$0xff]   ;;  %v1006_v55 = vld [vmem:[#allocation5 + $0x168] sm:$0xff]  }
  0x48   :  { %879 = vmatprep.subr.bf16.mxu1 %v982_v18  ;;  %v1005_v54 = vld [vmem:[#allocation5 + $0x120] sm:$0xff]   ;;  %v68_v57 = vld [vmem:[#allocation2 + $0x28] sm:$0xff]  ;;  %v1007_v58 = vld [vmem:[#allocation5 + $0x128] sm:$0xff]  }
  0x49   :  { %858 = vmatpush3.bf16.msra.mxu0 %v981_v17  ;;  %v1012_v56 = vld [vmem:[#allocation5 + $0x180] sm:$0xff]   ;;  %v1008_v59 = vld [vmem:[#allocation5 + $0x170] sm:$0xff]   ;;  %v76_v63 = vld [vmem:[#allocation2 + $0x68] sm:$0xff] }
  0x4a   :  { %859 = vmatprep.subr.bf16.mxu0 %v984_v20  ;;  %v75_v60 = vld [vmem:[#allocation2 + $0x60] sm:$0xff]  ;;  %v69_v62 = vld [vmem:[#allocation2 + $0x30] sm:$0xff]  ;;  %v1010_v2 = vld [vmem:[#allocation5 + $0x178] sm:$0xff]  }
  0x4b   :  { %880 = vmatpush3.bf16.msra.mxu1 %v983_v19  ;;  %v82_v61 = vpack.c.bf16 %v75_v60, %v68_v57  ;;  %v83_v0 = vpack.c.bf16 %v76_v63, %v69_v62  ;;  %v1009_v1 = vld [vmem:[#allocation5 + $0x130] sm:$0xff]   ;;  %v1011_v3 = vld [vmem:[#allocation5 + $0x138] sm:$0xff]   ;;  %v74_v5 = vld [vmem:[#allocation2 + $0x58] sm:$0xff] }
  0x4c   :  { %881 = vmatprep.subr.bf16.mxu1 %v986_v22  ;;  %v67_v4 = vld [vmem:[#allocation2 + $0x20] sm:$0xff]  ;;  %v1013_v7 = vld [vmem:[#allocation7] sm:$0xff]   ;;  %v1015_v9 = vld [vmem:[#allocation7 + $0x10] sm:$0xff]  }
  0x4d   :  { %860 = vmatpush3.bf16.msra.mxu0 %v985_v21  ;;  %v81_v6 = vpack.c.bf16 %v74_v5, %v67_v4  ;;  %v1014_v8 = vld [vmem:[#allocation7 + $0x8] sm:$0xff]   ;;  %v1016_v10 = vld [vmem:[#allocation7 + $0x18] sm:$0xff]   ;;  %v1017_v11 = vld [vmem:[#allocation7 + $0x20] sm:$0xff]  }
  0x4e   :  { %861 = vmatprep.subr.bf16.mxu0 %v988_v24  ;;  %v1018_v12 = vld [vmem:[#allocation7 + $0x28] sm:$0xff]   ;;  %v1019_v13 = vld [vmem:[#allocation7 + $0x30] sm:$0xff]   ;;  %v1020_v14 = vld [vmem:[#allocation7 + $0x38] sm:$0xff]  }
  0x4f   :  { %882 = vmatpush3.bf16.msra.mxu1 %v987_v23  ;;  %v789_v16 = vld [vmem:[%s1232_s2] ss:$0 sm:$0xff] }
  0x50   :  { %883 = vmatprep.subr.bf16.mxu1 %v990_v26 }
  0x51   :  { %862 = vmatpush3.bf16.msra.mxu0 %v989_v25 }
  0x52   :  { %863 = vmatprep.subr.bf16.mxu0 %v992_v28 }
  0x53   :  { %884 = vmatpush3.bf16.msra.mxu1 %v991_v27 }
  0x54   :  { %885 = vmatprep.subr.bf16.mxu1 %v994_v30 }
  0x55   :  { %864 = vmatpush3.bf16.msra.mxu0 %v993_v29 }
  0x56   :  { %893 = vmatprep.subr.bf16.mxu0 %v996_v38 }
  0x57   :  { %886 = vmatpush3.bf16.msra.mxu1 %v995_v34 }
  0x58   :  { %926 = vmatprep.subr.bf16.mxu1 %v1122_v43  ;;  %520 = vmatmul.mubr.bf16.vlgmr.msra.gmra.mrb[0].mxu0 %v77_v37 }
  0x59   :  { %894 = vmatpush3.bf16.msra.mxu0 %v997_v42  ;;  %601 = vmatprep.mubr.bf16.mxu0 %v82_v61 }
  0x5a   :  { %561 = vmatmul.mubr.bf16.vlgmr.msra.gmra.mrb[0].mxu1 %v79_v46  ;;  %895 = vmatprep.subr.bf16.mxu0 %v998_v47 }
  0x5b   :  { %928 = vmatprep.mubr.msk.bf16.mxu1 %vm1123_vm0, %v1122_v43  ;;  %927 = vmatpush3.bf16.msra.mxu1 %v1012_v56 }
  0x5c   :  { %932 = vmatprep.subr.bf16.mxu1 %v1122_v43 }
  0x5d   :  { %896 = vmatpush3.bf16.msra.mxu0 %v999_v48 }
  0x5e   :  { %897 = vmatprep.subr.bf16.mxu0 %v1000_v49  ;;  %v848_v49 = vld [vmem:[%s1234_s4] ss:$0 sm:$0xff] }
  0x61   :  { %898 = vmatpush3.bf16.msra.mxu0 %v1001_v50 }
  0x62   :  { %899 = vmatprep.subr.bf16.mxu0 %v1002_v51  ;;  %929 = vmatmul.mubr.msk.bf16.vlgmr.msra.gmra.mrb[4].mxu1 %vm483_vm1, %v83_v0 }
  0x63   :  { %948 = vmatprep.mubr.msk.bf16.mxu1 %vm1123_vm0, %v1122_v43  ;;  %933 = vmatpush3.bf16.msra.mxu1 %v1013_v7 }
  0x64   :  { %934 = vmatprep.subr.bf16.mxu1 %v1122_v43 }
  0x65   :  { %900 = vmatpush3.bf16.msra.mxu0 %v1003_v52 }
  0x66   :  { %901 = vmatprep.subr.bf16.mxu0 %v1004_v53 }
  0x67   :  { %935 = vmatpush3.bf16.msra.mxu1 %v1014_v8 }
  0x68   :  { %936 = vmatprep.subr.bf16.mxu1 %v1122_v43 }
  0x69   :  { %902 = vmatpush3.bf16.msra.mxu0 %v1005_v54 }
  0x6a   :  { %903 = vmatprep.subr.bf16.mxu0 %v1006_v55 }
  0x6b   :  { %937 = vmatpush3.bf16.msra.mxu1 %v1015_v9 }
  0x6c   :  { %938 = vmatprep.subr.bf16.mxu1 %v1122_v43 }
  0x6d   :  { %904 = vmatpush3.bf16.msra.mxu0 %v1007_v58 }
  0x6e   :  { %905 = vmatprep.subr.bf16.mxu0 %v1008_v59 }
  0x6f   :  { %939 = vmatpush3.bf16.msra.mxu1 %v1016_v10 }
  0x70   :  { %940 = vmatprep.subr.bf16.mxu1 %v1122_v43 }
  0x71   :  { %906 = vmatpush3.bf16.msra.mxu0 %v1009_v1 }
  0x72   :  { %907 = vmatprep.subr.bf16.mxu0 %v1010_v2 }
  0x73   :  { %941 = vmatpush3.bf16.msra.mxu1 %v1017_v11 }
  0x74   :  { %942 = vmatprep.subr.bf16.mxu1 %v1122_v43 }
  0x75   :  { %908 = vmatpush3.bf16.msra.mxu0 %v1011_v3 }
  0x77   :  { %943 = vmatpush3.bf16.msra.mxu1 %v1018_v12 }
  0x78   :  { %602 = vmatmul.mubr.bf16.vlgmr.msra.gmra.mrb[4].mxu0 %v81_v6  ;;  %944 = vmatprep.subr.bf16.mxu1 %v1122_v43 }
  0x7b   :  { %945 = vmatpush3.bf16.msra.mxu1 %v1019_v13 }
  0x7c   :  { %946 = vmatprep.subr.bf16.mxu1 %v1122_v43 }
  0x7f   :  { %947 = vmatpush3.bf16.msra.mxu1 %v1020_v14 }
 0x12b   :  { %v865_v15 = vpop.f32.mrb[0].mxu0 }
 0x12c   :  { %v866_v17 = vpop.f32.mrb[1].mxu0 }
 0x12d   :  { %v867_v18 = vadd.f32 %v866_v17, %v865_v15  ;;  %v868_v19 = vpop.f32.mrb[2].mxu0  ;;  %v887_v20 = vpop.f32.mrb[0].mxu1 }
 0x12e   :  { %v869_v21 = vpop.f32.mrb[3].mxu0  ;;  %v888_v24 = vpop.f32.mrb[1].mxu1 }
 0x12f   :  { %v522_v22 = vadd.f32 %v867_v18, %v789_v16  ;;  %v870_v23 = vadd.f32 %v869_v21, %v868_v19  ;;  %v889_v25 = vadd.f32 %v888_v24, %v887_v20  ;;  %v890_v26 = vpop.f32.mrb[2].mxu1 }
 0x130   :  { %v891_v28 = vpop.f32.mrb[3].mxu1 }
 0x131   :  { %v525_v27 = vadd.f32 %v870_v23, %v789_v16  ;;  %v563_v29 = vadd.f32 %v889_v25, %v522_v22  ;;  %v892_v30 = vadd.f32 %v891_v28, %v890_v26 }
 0x133   :  { %v566_v31 = vadd.f32 %v892_v30, %v525_v27 }
 0x135   :  { %v644_v32 = vpop.f32.mrb[4].mxu1 }
 0x136   :  { %v930_v33 = vpop.f32.mrb[5].mxu1 }
 0x137   :  { %v647_v34 = vpop.f32.mrb[6].mxu1 }
 0x138   :  { %v931_v35 = vpop.f32.mrb[7].mxu1 }
 0x14b   :  { %v909_v36 = vpop.f32.mrb[4].mxu0 }
 0x14c   :  { %v910_v37 = vpop.f32.mrb[5].mxu0 }
 0x14d   :  { %v911_v38 = vadd.f32 %v910_v37, %v909_v36  ;;  %v912_v39 = vpop.f32.mrb[6].mxu0 }
 0x14e   :  { %v913_v40 = vpop.f32.mrb[7].mxu0 }
 0x14f   :  { %v604_v41 = vadd.f32 %v911_v38, %v563_v29  ;;  %v914_v42 = vadd.f32 %v913_v40, %v912_v39 }
 0x151   :  { %v645_v43 = vadd.f32 %v644_v32, %v604_v41  ;;  %v607_v44 = vadd.f32 %v914_v42, %v566_v31 }
 0x153   :  { %v648_v45 = vadd.f32 %v647_v34, %v607_v44  ;;  %v651_v46 = vmax.f32 %v645_v43, 0.0 }
 0x155   :  { %v652_v47 = vmax.f32 %v648_v45, 0.0 }
 0x157   :  { %v653_v48 = vpack.c.bf16 %v652_v47, %v651_v46 }
 0x159   :  { %949 = vmatmul.mubr.bf16.vlgmr.msra.gmra.mrb[8].mxu1 %v653_v48 }
 0x22c   :  { %v752_v50 = vpop.f32.mrb[8].mxu1 }
 0x22d   :  { %v766_v51 = vadd.f32 %v848_v49, %v752_v50  ;;  %v950_v52 = vpop.f32.mrb[9].mxu1 }
 0x22e   :  { %v755_v53 = vpop.f32.mrb[10].mxu1 }
 0x22f   :  { %769 = vst.msk [vmem:[#allocation8] sm:$0xff] %vm768_vm2, %v766_v51  ;;  %v767_v54 = vadd.f32 %v848_v49, %v755_v53  ;;  %v951_v55 = vpop.f32.mrb[11].mxu1 }
 0x231   :  { %770 = vst.msk [vmem:[#allocation8 + $0x8] sm:$0xff] %vm768_vm2, %v767_v54 }
 0x232   :  { %1098 = shalt.err (!%p1095_p0)
}
 0x233   :  { %s1099_s12 = scalar_lea.hbm %s1235_s5, 256 }
 0x234   :  { %p1100_p1 = scmp.ne.s32.totalorder %s1235_s5, %s1099_s12  ;;  %p1103_p2 = scmp.lt.u32.totalorder %s1099_s12, %s1235_s5 }
 0x236   :  { %p1105_p3 = pnand %p1103_p2, %p1100_p1 }
 0x238   :  { %1108 = shalt.err (!%p1105_p3)
}
 0x239   :  { %s1125_s1 = smov 128   ;;  %s1126_s17 = smov 8  }
 0x23a   :  { %782 = dma.vmem_to_hbm [thread:$0]  %s777_s9, 256, %s1235_s5, [#allocation4], %s1125_s1, %s1125_s1, %s1126_s17  }
 0x23b   :  { %1113 = dma.done.wait [#allocation4], 256  }
 0x23c   :  { %1114 = vsyncadd [#allocation4], 4294967040 }
 0x23d   :  { %786 = vsyncpa [#allocation3], 1 }
 0x23e   :  { %787 = vsyncpa [#allocation6], 1 }
 0x23f   :  { %788 = vsyncpa [#allocation4], 1 }

</bundles_post_ra>
